<compile_context>
chip_gen: v7x
topology: tpu7x:2x2x1
jax: 0.10.0
libtpu: 0.0.40
codegen_flags: <defaults>
</compile_context>

<pallas_src>
import numpy as np
import jax
import jax.numpy as jnp
from jax.experimental import pallas as pl
from jax.experimental.pallas import tpu as pltpu

LANE = 128


def _round_up(x, m):
    return ((x + m - 1) // m) * m


def _vmem_capacity_bytes():
    """Trace-time VMEM capacity; conservative (v7x-class) fallback if unavailable."""
    try:
        info = pltpu.get_tpu_info()
        cap = int(getattr(info, "vmem_capacity_bytes", 0))
        if cap > 0:
            return cap
    except Exception:
        pass
    return 64 << 20


def _bimp_kernel(a_ref, ef_ref, invc_ref, isint_ref, nodes_ref,
                 w_fused_ref, w_self_ref, b_self_ref, b_umsg_ref, b_mf_ref,
                 out_ref, acc_ref):
    k = pl.program_id(1)

    @pl.when(k == 0)
    def _init():
        acc_ref[...] = jnp.zeros_like(acc_ref)

    # Single MXU pass per (row-tile, edge-tile): 0/1 incidence tile @ flattened
    # edge-feature tile.  K = tE (the big axis), f32 accumulation in VMEM scratch.
    acc_ref[...] += jnp.dot(a_ref[...], ef_ref[...],
                            preferred_element_type=jnp.float32)

    @pl.when(k == pl.num_programs(1) - 1)
    def _finalize():
        invc = invc_ref[...]                                 # (tI, 1) f32, 0 if no in-edges
        nonempty = jnp.where(invc > 0.0, 1.0, 0.0)           # mean-agg of empty dest == 0
        bias = (b_self_ref[...]                              # update_self bias (all rows)
                + isint_ref[...] * b_umsg_ref[...]           # update_message bias (interior)
                + nonempty * b_mf_ref[...])                  # b_msg @ W_umsg (non-empty rows)
        d2 = w_fused_ref.shape[0]                            # 2 * d_in
        for b in range(nodes_ref.shape[0]):                  # B is small: static unroll
            agg = acc_ref[:, b * d2:(b + 1) * d2] * invc     # f32 mean of summed edge feats
            msg_up = jnp.dot(agg.astype(jnp.bfloat16), w_fused_ref[...],
                             preferred_element_type=jnp.float32)
            self_up = jnp.dot(nodes_ref[b], w_self_ref[...],
                              preferred_element_type=jnp.float32)
            out_ref[b] = self_up + msg_up + bias


def boundary_injected_mp_forward(params, x_int, bv, edge_index_int, edge_index_bound,
                                 num_nodes_int, num_nodes_bound,
                                 *, edge_tile=None, row_tile=256):
    x_int = jnp.asarray(x_int, jnp.float32)
    bv = jnp.asarray(bv, jnp.float32)
    if x_int.ndim in (1, 2):
        # Mirrors the PyTorch reference exactly (reshape(1, -1, 1)).
        x_int = x_int.reshape(1, -1, 1)

    # ---- host glue: boundary-edge filtering (torch.isin -> dynamic shape) ----
    ei = np.asarray(edge_index_int)
    eb = np.asarray(edge_index_bound)
    node_index_bound = np.arange(num_nodes_int, num_nodes_int + num_nodes_bound)
    eb = eb[:, np.isin(eb, node_index_bound)[0]]
    src_int, dst_int = ei[0], ei[1]
    src_bound, dst_bound = eb[0], eb[1]

    B, n_int, d_in = x_int.shape
    n_bound = bv.shape[1]
    emb = params["w_self"].shape[1]
    n_all = n_int + n_bound

    # ---- host glue: per-edge endpoint gather + concat ----
    # TODO(synk): for very large graphs gather endpoint rows per edge tile inside the
    # kernel via PrefetchScalarGridSpec (scalar-prefetched src/dst indices) instead
    # of materializing per-edge features in HBM.
    feat_int = jnp.concatenate([x_int[:, src_int], x_int[:, dst_int]], axis=-1)
    feat_bound = jnp.concatenate(
        [bv[:, src_bound - num_nodes_int], x_int[:, dst_bound]], axis=-1)
    edge_feat = jnp.concatenate([feat_int, feat_bound], axis=1)      # (B, E, 2*d_in) f32
    E = edge_feat.shape[1]
    BF = B * 2 * d_in

    # ---- per-generation tiling / VMEM budget ----
    vmem_cap = _vmem_capacity_bytes()
    big_vmem = vmem_cap >= (100 << 20)            # v5e/v6e: 128 MiB, v7x: 64 MiB
    if edge_tile is None:
        edge_tile = 1024 if big_vmem else 512
    budget = (96 << 20) if big_vmem else (48 << 20)

    # Row (node) tiling: multiple of 8; prefer >= 2 row tiles so v7x's second
    # TensorCore gets work even when B == 1.
    n_all_8 = _round_up(n_all, 8)
    tI = min(n_all_8, row_tile)
    if n_all_8 >= 16 and _round_up(n_all, tI) == tI:
        tI = _round_up((n_all_8 + 1) // 2, 8)
    n_all_pad = _round_up(n_all, tI)
    n_row_tiles = n_all_pad // tI

    def vmem_est(tE_):
        lane = lambda n: _round_up(max(n, 1), LANE)
        sub = lambda n: _round_up(max(n, 1), 8)
        est = 2 * sub(tI) * lane(tE_) * 2                  # A tile (bf16, double-buffered)
        est += 2 * sub(tE_) * lane(BF) * 2                 # edge-feature tile (bf16)
        est += 2 * 2 * sub(tI) * lane(1) * 4               # 1/count + is_interior tiles
        est += 2 * B * sub(tI) * lane(d_in) * 2            # node-feature block (bf16)
        est += 2 * B * sub(tI) * lane(emb) * 4             # output block (f32)
        est += sub(tI) * lane(BF) * 4                      # f32 accumulator scratch
        est += 2 * (sub(2 * d_in) + sub(d_in)) * lane(emb) * 2   # fused + self weights
        est += 2 * 3 * sub(1) * lane(emb) * 4              # biases
        return est

    tE = min(_round_up(edge_tile, LANE), _round_up(max(E, 1), LANE))
    while tE > LANE and vmem_est(tE) > budget:
        tE = max(LANE, (tE // 2) // LANE * LANE)
    E_pad = _round_up(max(E, 1), tE)
    n_e_tiles = E_pad // tE
    vmem_limit = int(min(budget, max(2 * vmem_est(tE), 16 << 20)))

    # ---- flattened bf16 edge features: batch folded into the lanes ----
    ef_flat = edge_feat.transpose(1, 0, 2).reshape(E, BF)
    ef_flat = jnp.pad(ef_flat, ((0, E_pad - E), (0, 0))).astype(jnp.bfloat16)

    # ---- exact 0/1 incidence matrix + f32 mean scaling / interior mask ----
    dst_all = np.concatenate([dst_int, dst_bound]).astype(np.int64)
    a01 = np.zeros((n_all_pad, E_pad), np.float32)
    if E > 0:
        a01[dst_all, np.arange(E)] = 1.0                   # exact in bf16
    counts = a01.sum(axis=1, keepdims=True)
    inv_count = np.where(counts > 0, 1.0 / np.maximum(counts, 1.0), 0.0).astype(np.float32)
    is_int = np.zeros((n_all_pad, 1), np.float32)
    is_int[:n_int] = 1.0
    a01 = jnp.asarray(a01, jnp.bfloat16)
    inv_count = jnp.asarray(inv_count)
    is_int = jnp.asarray(is_int)

    # ---- fused weights (no nonlinearity between message and update_message) ----
    w_msg = jnp.asarray(params["w_msg"], jnp.float32)
    b_msg = jnp.asarray(params["b_msg"], jnp.float32).reshape(1, -1)
    w_self = jnp.asarray(params["w_self"], jnp.float32)
    b_self = jnp.asarray(params["b_self"], jnp.float32).reshape(1, -1)
    w_umsg = jnp.asarray(params["w_umsg"], jnp.float32)
    b_umsg = jnp.asarray(params["b_umsg"], jnp.float32).reshape(1, -1)
    w_fused = (w_msg @ w_umsg).astype(jnp.bfloat16)        # (2*d_in, emb)
    b_msg_fused = b_msg @ w_umsg                           # (1, emb), gated by nonempty
    w_self_bf = w_self.astype(jnp.bfloat16)

    # Interior + boundary nodes share one tiled row axis (uniform self-update path;
    # boundary rows have inv_count = 0 and is_interior = 0).
    nodes = jnp.concatenate([x_int, bv], axis=1)
    nodes = jnp.pad(nodes, ((0, 0), (0, n_all_pad - n_all), (0, 0))).astype(jnp.bfloat16)

    # NOTE: post-fusion the weight/bias operands are tiny, so single-buffering them
    # (pipeline_mode=pl.Buffered(1)) is not worth the extra constraint; skipped.
    out = pl.pallas_call(
        _bimp_kernel,
        grid=(n_row_tiles, n_e_tiles),
        in_specs=[
            pl.BlockSpec((tI, tE), lambda i, k: (i, k)),             # A01 tile
            pl.BlockSpec((tE, BF), lambda i, k: (k, 0)),             # edge-feature tile
            pl.BlockSpec((tI, 1), lambda i, k: (i, 0)),              # 1 / in-degree
            pl.BlockSpec((tI, 1), lambda i, k: (i, 0)),              # is_interior
            pl.BlockSpec((B, tI, d_in), lambda i, k: (0, i, 0)),     # [x_int ; bv] rows
            pl.BlockSpec((2 * d_in, emb), lambda i, k: (0, 0)),      # W_msg @ W_umsg (bf16)
            pl.BlockSpec((d_in, emb), lambda i, k: (0, 0)),          # W_self (bf16)
            pl.BlockSpec((1, emb), lambda i, k: (0, 0)),             # b_self
            pl.BlockSpec((1, emb), lambda i, k: (0, 0)),             # b_umsg
            pl.BlockSpec((1, emb), lambda i, k: (0, 0)),             # b_msg @ W_umsg
        ],
        out_specs=pl.BlockSpec((B, tI, emb), lambda i, k: (0, i, 0)),
        out_shape=jax.ShapeDtypeStruct((B, n_all_pad, emb), jnp.float32),
        scratch_shapes=[pltpu.VMEM((tI, BF), jnp.float32)],
        compiler_params=pltpu.CompilerParams(
            dimension_semantics=("parallel", "arbitrary"),
            vmem_limit_bytes=vmem_limit),
    )(a01, ef_flat, inv_count, is_int, nodes,
      w_fused, w_self_bf, b_self, b_umsg, b_msg_fused)

    # Interior / boundary row split (outputs are already at true embed width).
    return out[:, :n_int], out[:, n_int:n_all]


if __name__ == "__main__":
    input_dim, message_dim, embed_dim = 4, 8, 8
    num_nodes_int, num_nodes_bound = 16, 8
    B, E_int, E_bound = 2, 24, 12

    key = jax.random.PRNGKey(0)
    keys = jax.random.split(key, 12)

    def linear_params(kw, kb, fan_in, fan_out):
        bound = 1.0 / np.sqrt(fan_in)
        w = jax.random.uniform(kw, (fan_in, fan_out), jnp.float32, -bound, bound)
        b = jax.random.uniform(kb, (1, fan_out), jnp.float32, -bound, bound)
        return w, b

    w_msg, b_msg = linear_params(keys[0], keys[1], 2 * input_dim, message_dim)
    w_self, b_self = linear_params(keys[2], keys[3], input_dim, embed_dim)
    w_umsg, b_umsg = linear_params(keys[4], keys[5], message_dim, embed_dim)
    params = dict(w_msg=w_msg, b_msg=b_msg, w_self=w_self, b_self=b_self,
                  w_umsg=w_umsg, b_umsg=b_umsg)

    x_int = jax.random.normal(keys[6], (B, num_nodes_int, input_dim), jnp.float32)
    bv = jax.random.normal(keys[7], (B, num_nodes_bound, input_dim), jnp.float32)

    src_int = jax.random.randint(keys[8], (E_int,), 0, num_nodes_int)
    dst_int = jax.random.randint(keys[9], (E_int,), 0, num_nodes_int)
    dst_int = dst_int.at[0].set(num_nodes_int - 1)   # so MeanAggregation dim_size == num_nodes_int
    edge_index_int = jnp.stack([src_int, dst_int]).astype(jnp.int32)

    src_bound = jax.random.randint(keys[10], (E_bound,),
                                   num_nodes_int, num_nodes_int + num_nodes_bound)
    dst_bound = jax.random.randint(keys[11], (E_bound,), 0, num_nodes_int)
    edge_index_bound = jnp.stack([src_bound, dst_bound]).astype(jnp.int32)

    x_up, bv_up = boundary_injected_mp_forward(
        params, x_int, bv, edge_index_int, edge_index_bound,
        num_nodes_int, num_nodes_bound)
    jax.block_until_ready((x_up, bv_up))

    # ---- plain-JAX f32 reference (kernel uses bf16 MXU inputs, f32 accumulation ->
    # expect ~1e-3..1e-2 relative deviation) ----
    ei = np.asarray(edge_index_int)
    eb = np.asarray(edge_index_bound)
    eb = eb[:, np.isin(eb, np.arange(num_nodes_int, num_nodes_int + num_nodes_bound))[0]]
    si, di = ei[0], ei[1]
    sb, db = eb[0], eb[1]
    feat = jnp.concatenate(
        [jnp.concatenate([x_int[:, si], x_int[:, di]], -1),
         jnp.concatenate([bv[:, sb - num_nodes_int], x_int[:, db]], -1)], axis=1)
    msg = feat @ w_msg + b_msg[0]
    dst = jnp.asarray(np.concatenate([di, db]))
    seg_sum = jax.vmap(lambda m: jax.ops.segment_sum(m, dst, num_nodes_int))(msg)
    cnt = jax.ops.segment_sum(jnp.ones((dst.shape[0],), jnp.float32), dst, num_nodes_int)
    agg = seg_sum / jnp.maximum(cnt, 1.0)[None, :, None]
    x_up_ref = x_int @ w_self + b_self[0] + agg @ w_umsg + b_umsg[0]
    bv_up_ref = bv @ w_self + b_self[0]

    assert x_up.shape == (B, num_nodes_int, embed_dim)
    assert bv_up.shape == (B, num_nodes_bound, embed_dim)
    np.testing.assert_allclose(np.asarray(x_up), np.asarray(x_up_ref), rtol=2e-2, atol=2e-2)
    np.testing.assert_allclose(np.asarray(bv_up), np.asarray(bv_up_ref), rtol=2e-2, atol=2e-2)

    print("KERNEL_OK")
</pallas_src>

<mosaic_0001>
module attributes {stable_mosaic.version = 11 : i64} {
  func.func @_bimp_kernel(%arg0: i32, %arg1: i32, %arg2: memref<16x128xbf16, #tpu.memory_space<vmem>>, %arg3: memref<128x16xbf16, #tpu.memory_space<vmem>>, %arg4: memref<16x1xf32, #tpu.memory_space<vmem>>, %arg5: memref<16x1xf32, #tpu.memory_space<vmem>>, %arg6: memref<2x16x4xbf16, #tpu.memory_space<vmem>>, %arg7: memref<8x8xbf16, #tpu.memory_space<vmem>>, %arg8: memref<4x8xbf16, #tpu.memory_space<vmem>>, %arg9: memref<1x8xf32, #tpu.memory_space<vmem>>, %arg10: memref<1x8xf32, #tpu.memory_space<vmem>>, %arg11: memref<1x8xf32, #tpu.memory_space<vmem>>, %arg12: memref<2x16x8xf32, #tpu.memory_space<vmem>>, %arg13: memref<16x16xf32, #tpu.memory_space<vmem>>) attributes {dimension_semantics = [#tpu.dimension_semantics<parallel>, #tpu.dimension_semantics<arbitrary>], iteration_bounds = array<i64: 2, 1>, scalar_prefetch = 0 : i64, scratch_operands = 1 : i64, tpu.core_type = #tpu.core_type<tc>, window_params = [{transform_indices = @transform_0, window_bounds = array<i64: 16, 128>}, {transform_indices = @transform_1, window_bounds = array<i64: 128, 16>}, {transform_indices = @transform_2, window_bounds = array<i64: 16, 1>}, {transform_indices = @transform_3, window_bounds = array<i64: 16, 1>}, {transform_indices = @transform_4, window_bounds = array<i64: 2, 16, 4>}, {pipeline_mode = #tpu.pipeline_mode<synchronous>, transform_indices = @transform_5, window_bounds = array<i64: 8, 8>}, {pipeline_mode = #tpu.pipeline_mode<synchronous>, transform_indices = @transform_6, window_bounds = array<i64: 4, 8>}, {pipeline_mode = #tpu.pipeline_mode<synchronous>, transform_indices = @transform_7, window_bounds = array<i64: 1, 8>}, {pipeline_mode = #tpu.pipeline_mode<synchronous>, transform_indices = @transform_8, window_bounds = array<i64: 1, 8>}, {pipeline_mode = #tpu.pipeline_mode<synchronous>, transform_indices = @transform_9, window_bounds = array<i64: 1, 8>}, {transform_indices = @transform_10, window_bounds = array<i64: 2, 16, 8>}]} {
    %c0_i32 = arith.constant 0 : i32
    %0 = arith.cmpi eq, %arg1, %c0_i32 : i32
    %1 = arith.extui %0 : i1 to i32
    %c0_i32_0 = arith.constant 0 : i32
    %2 = arith.cmpi ne, %1, %c0_i32_0 : i32
    scf.if %2 {
      %cst_10 = arith.constant 0.000000e+00 : f32
      %12 = vector.broadcast %cst_10 : f32 to vector<16x16xf32>
      %c0_11 = arith.constant 0 : index
      %c0_12 = arith.constant 0 : index
      %13 = vector.load %arg13[%c0_11, %c0_12] : memref<16x16xf32, #tpu.memory_space<vmem>>, vector<16x16xf32>
      tpu.vector_store %arg13[%c0_11, %c0_12], %12 {strides = array<i32>} : memref<16x16xf32, #tpu.memory_space<vmem>>, vector<16x16xf32>,
    } else {
    }
    %c0 = arith.constant 0 : index
    %c0_1 = arith.constant 0 : index
    %3 = vector.load %arg13[%c0, %c0_1] : memref<16x16xf32, #tpu.memory_space<vmem>>, vector<16x16xf32>
    %c0_2 = arith.constant 0 : index
    %c0_3 = arith.constant 0 : index
    %4 = vector.load %arg2[%c0_2, %c0_3] : memref<16x128xbf16, #tpu.memory_space<vmem>>, vector<16x128xbf16>
    %c0_4 = arith.constant 0 : index
    %c0_5 = arith.constant 0 : index
    %5 = vector.load %arg3[%c0_4, %c0_5] : memref<128x16xbf16, #tpu.memory_space<vmem>>, vector<128x16xbf16>
    %cst = arith.constant dense<0.000000e+00> : vector<16x16xf32>
    %6 = tpu.matmul %4, %5, %cst {dimension_numbers = #tpu.dot_dimension_numbers<[1], [0], [0], [1], [0, 0, 1, 1], [], []>} : vector<16x128xbf16>, vector<128x16xbf16>, vector<16x16xf32> -> vector<16x16xf32>
    %7 = arith.addf %3, %6 : vector<16x16xf32>
    %c0_6 = arith.constant 0 : index
    %c0_7 = arith.constant 0 : index
    %8 = vector.load %arg13[%c0_6, %c0_7] : memref<16x16xf32, #tpu.memory_space<vmem>>, vector<16x16xf32>
    tpu.vector_store %arg13[%c0_6, %c0_7], %7 {strides = array<i32>} : memref<16x16xf32, #tpu.memory_space<vmem>>, vector<16x16xf32>,
    %c0_i32_8 = arith.constant 0 : i32
    %9 = arith.cmpi eq, %arg1, %c0_i32_8 : i32
    %10 = arith.extui %9 : i1 to i32
    %c0_i32_9 = arith.constant 0 : i32
    %11 = arith.cmpi ne, %10, %c0_i32_9 : i32
    scf.if %11 {
      %c0_10 = arith.constant 0 : index
      %c0_11 = arith.constant 0 : index
      %12 = vector.load %arg4[%c0_10, %c0_11] : memref<16x1xf32, #tpu.memory_space<vmem>>, vector<16x1xf32>
      %cst_12 = arith.constant 0.000000e+00 : f32
      %13 = vector.broadcast %cst_12 : f32 to vector<16x1xf32>
      %14 = arith.cmpf ogt, %12, %13 : vector<16x1xf32>
      %cst_13 = arith.constant 1.000000e+00 : f32
      %cst_14 = arith.constant 0.000000e+00 : f32
      %15 = vector.broadcast %cst_13 : f32 to vector<16x1xf32>
      %16 = vector.broadcast %cst_14 : f32 to vector<16x1xf32>
      %17 = arith.select %14, %15, %16 : vector<16x1xi1>, vector<16x1xf32>
      %c0_15 = arith.constant 0 : index
      %c0_16 = arith.constant 0 : index
      %18 = vector.load %arg9[%c0_15, %c0_16] : memref<1x8xf32, #tpu.memory_space<vmem>>, vector<1x8xf32>
      %c0_17 = arith.constant 0 : index
      %c0_18 = arith.constant 0 : index
      %19 = vector.load %arg5[%c0_17, %c0_18] : memref<16x1xf32, #tpu.memory_space<vmem>>, vector<16x1xf32>
      %c0_19 = arith.constant 0 : index
      %c0_20 = arith.constant 0 : index
      %20 = vector.load %arg10[%c0_19, %c0_20] : memref<1x8xf32, #tpu.memory_space<vmem>>, vector<1x8xf32>
      %21 = vector.broadcast %19 : vector<16x1xf32> to vector<16x8xf32>
      %22 = vector.broadcast %20 : vector<1x8xf32> to vector<16x8xf32>
      %23 = arith.mulf %21, %22 : vector<16x8xf32>
      %24 = vector.broadcast %18 : vector<1x8xf32> to vector<16x8xf32>
      %25 = arith.addf %24, %23 : vector<16x8xf32>
      %c0_21 = arith.constant 0 : index
      %c0_22 = arith.constant 0 : index
      %26 = vector.load %arg11[%c0_21, %c0_22] : memref<1x8xf32, #tpu.memory_space<vmem>>, vector<1x8xf32>
      %27 = vector.broadcast %17 : vector<16x1xf32> to vector<16x8xf32>
      %28 = vector.broadcast %26 : vector<1x8xf32> to vector<16x8xf32>
      %29 = arith.mulf %27, %28 : vector<16x8xf32>
      %30 = arith.addf %25, %29 : vector<16x8xf32>
      %c0_23 = arith.constant 0 : index
      %c0_24 = arith.constant 0 : index
      %31 = vector.load %arg13[%c0_23, %c0_24] : memref<16x16xf32, #tpu.memory_space<vmem>>, vector<16x8xf32>
      %32 = vector.broadcast %12 : vector<16x1xf32> to vector<16x8xf32>
      %33 = arith.mulf %31, %32 : vector<16x8xf32>
      %34 = arith.truncf %33 : vector<16x8xf32> to vector<16x8xbf16>
      %c0_25 = arith.constant 0 : index
      %c0_26 = arith.constant 0 : index
      %35 = vector.load %arg7[%c0_25, %c0_26] : memref<8x8xbf16, #tpu.memory_space<vmem>>, vector<8x8xbf16>
      %cst_27 = arith.constant dense<0.000000e+00> : vector<16x8xf32>
      %36 = tpu.matmul %34, %35, %cst_27 {dimension_numbers = #tpu.dot_dimension_numbers<[1], [0], [0], [1], [0, 0, 1, 1], [], []>} : vector<16x8xbf16>, vector<8x8xbf16>, vector<16x8xf32> -> vector<16x8xf32>
      %c0_28 = arith.constant 0 : index
      %c0_29 = arith.constant 0 : index
      %c0_30 = arith.constant 0 : index
      %37 = vector.load %arg6[%c0_28, %c0_29, %c0_30] : memref<2x16x4xbf16, #tpu.memory_space<vmem>>, vector<1x16x4xbf16>
      %38 = vector.shape_cast %37 : vector<1x16x4xbf16> to vector<16x4xbf16>
      %c0_31 = arith.constant 0 : index
      %c0_32 = arith.constant 0 : index
      %39 = vector.load %arg8[%c0_31, %c0_32] : memref<4x8xbf16, #tpu.memory_space<vmem>>, vector<4x8xbf16>
      %cst_33 = arith.constant dense<0.000000e+00> : vector<16x8xf32>
      %40 = tpu.matmul %38, %39, %cst_33 {dimension_numbers = #tpu.dot_dimension_numbers<[1], [0], [0], [1], [0, 0, 1, 1], [], []>} : vector<16x4xbf16>, vector<4x8xbf16>, vector<16x8xf32> -> vector<16x8xf32>
      %41 = arith.addf %40, %36 : vector<16x8xf32>
      %42 = arith.addf %41, %30 : vector<16x8xf32>
      %c0_34 = arith.constant 0 : index
      %c0_35 = arith.constant 0 : index
      %c0_36 = arith.constant 0 : index
      %43 = vector.load %arg12[%c0_34, %c0_35, %c0_36] : memref<2x16x8xf32, #tpu.memory_space<vmem>>, vector<1x16x8xf32>
      %44 = vector.shape_cast %43 : vector<1x16x8xf32> to vector<16x8xf32>
      %45 = vector.shape_cast %42 : vector<16x8xf32> to vector<1x16x8xf32>
      tpu.vector_store %arg12[%c0_34, %c0_35, %c0_36], %45 {strides = array<i32>} : memref<2x16x8xf32, #tpu.memory_space<vmem>>, vector<1x16x8xf32>,
      %c0_37 = arith.constant 0 : index
      %c8 = arith.constant 8 : index
      %46 = vector.load %arg13[%c0_37, %c8] : memref<16x16xf32, #tpu.memory_space<vmem>>, vector<16x8xf32>
      %47 = vector.broadcast %12 : vector<16x1xf32> to vector<16x8xf32>
      %48 = arith.mulf %46, %47 : vector<16x8xf32>
      %49 = arith.truncf %48 : vector<16x8xf32> to vector<16x8xbf16>
      %c0_38 = arith.constant 0 : index
      %c0_39 = arith.constant 0 : index
      %50 = vector.load %arg7[%c0_38, %c0_39] : memref<8x8xbf16, #tpu.memory_space<vmem>>, vector<8x8xbf16>
      %cst_40 = arith.constant dense<0.000000e+00> : vector<16x8xf32>
      %51 = tpu.matmul %49, %50, %cst_40 {dimension_numbers = #tpu.dot_dimension_numbers<[1], [0], [0], [1], [0, 0, 1, 1], [], []>} : vector<16x8xbf16>, vector<8x8xbf16>, vector<16x8xf32> -> vector<16x8xf32>
      %c1 = arith.constant 1 : index
      %c0_41 = arith.constant 0 : index
      %c0_42 = arith.constant 0 : index
      %52 = vector.load %arg6[%c1, %c0_41, %c0_42] : memref<2x16x4xbf16, #tpu.memory_space<vmem>>, vector<1x16x4xbf16>
      %53 = vector.shape_cast %52 : vector<1x16x4xbf16> to vector<16x4xbf16>
      %c0_43 = arith.constant 0 : index
      %c0_44 = arith.constant 0 : index
      %54 = vector.load %arg8[%c0_43, %c0_44] : memref<4x8xbf16, #tpu.memory_space<vmem>>, vector<4x8xbf16>
      %cst_45 = arith.constant dense<0.000000e+00> : vector<16x8xf32>
      %55 = tpu.matmul %53, %54, %cst_45 {dimension_numbers = #tpu.dot_dimension_numbers<[1], [0], [0], [1], [0, 0, 1, 1], [], []>} : vector<16x4xbf16>, vector<4x8xbf16>, vector<16x8xf32> -> vector<16x8xf32>
      %56 = arith.addf %55, %51 : vector<16x8xf32>
      %57 = arith.addf %56, %30 : vector<16x8xf32>
      %c1_46 = arith.constant 1 : index
      %c0_47 = arith.constant 0 : index
      %c0_48 = arith.constant 0 : index
      %58 = vector.load %arg12[%c1_46, %c0_47, %c0_48] : memref<2x16x8xf32, #tpu.memory_space<vmem>>, vector<1x16x8xf32>
      %59 = vector.shape_cast %58 : vector<1x16x8xf32> to vector<16x8xf32>
      %60 = vector.shape_cast %57 : vector<16x8xf32> to vector<1x16x8xf32>
      tpu.vector_store %arg12[%c1_46, %c0_47, %c0_48], %60 {strides = array<i32>} : memref<2x16x8xf32, #tpu.memory_space<vmem>>, vector<1x16x8xf32>,
    } else {
    }
    return
  }
  func.func @transform_0(%arg0: i32, %arg1: i32) -> (i32, i32) {
    %c0_i32 = arith.constant 0 : i32
    return %arg0, %arg1 : i32, i32
  }
  func.func @transform_1(%arg0: i32, %arg1: i32) -> (i32, i32) {
    %c0_i32 = arith.constant 0 : i32
    %c0_i32_0 = arith.constant 0 : i32
    return %arg1, %c0_i32 : i32, i32
  }
  func.func @transform_2(%arg0: i32, %arg1: i32) -> (i32, i32) {
    %c0_i32 = arith.constant 0 : i32
    %c0_i32_0 = arith.constant 0 : i32
    return %arg0, %c0_i32 : i32, i32
  }
  func.func @transform_3(%arg0: i32, %arg1: i32) -> (i32, i32) {
    %c0_i32 = arith.constant 0 : i32
    %c0_i32_0 = arith.constant 0 : i32
    return %arg0, %c0_i32 : i32, i32
  }
  func.func @transform_4(%arg0: i32, %arg1: i32) -> (i32, i32, i32) {
    %c0_i32 = arith.constant 0 : i32
    %c0_i32_0 = arith.constant 0 : i32
    %c0_i32_1 = arith.constant 0 : i32
    return %c0_i32, %arg0, %c0_i32_0 : i32, i32, i32
  }
  func.func @transform_5(%arg0: i32, %arg1: i32) -> (i32, i32) {
    %c0_i32 = arith.constant 0 : i32
    %c0_i32_0 = arith.constant 0 : i32
    %c0_i32_1 = arith.constant 0 : i32
    return %c0_i32, %c0_i32_0 : i32, i32
  }
  func.func @transform_6(%arg0: i32, %arg1: i32) -> (i32, i32) {
    %c0_i32 = arith.constant 0 : i32
    %c0_i32_0 = arith.constant 0 : i32
    %c0_i32_1 = arith.constant 0 : i32
    return %c0_i32, %c0_i32_0 : i32, i32
  }
  func.func @transform_7(%arg0: i32, %arg1: i32) -> (i32, i32) {
    %c0_i32 = arith.constant 0 : i32
    %c0_i32_0 = arith.constant 0 : i32
    %c0_i32_1 = arith.constant 0 : i32
    return %c0_i32, %c0_i32_0 : i32, i32
  }
  func.func @transform_8(%arg0: i32, %arg1: i32) -> (i32, i32) {
    %c0_i32 = arith.constant 0 : i32
    %c0_i32_0 = arith.constant 0 : i32
    %c0_i32_1 = arith.constant 0 : i32
    return %c0_i32, %c0_i32_0 : i32, i32
  }
  func.func @transform_9(%arg0: i32, %arg1: i32) -> (i32, i32) {
    %c0_i32 = arith.constant 0 : i32
    %c0_i32_0 = arith.constant 0 : i32
    %c0_i32_1 = arith.constant 0 : i32
    return %c0_i32, %c0_i32_0 : i32, i32
  }
  func.func @transform_10(%arg0: i32, %arg1: i32) -> (i32, i32, i32) {
    %c0_i32 = arith.constant 0 : i32
    %c0_i32_0 = arith.constant 0 : i32
    %c0_i32_1 = arith.constant 0 : i32
    return %c0_i32, %arg0, %c0_i32_0 : i32, i32, i32
  }
}

</mosaic_0001>

<bundles_post_ra>
// kernel: tpu_custom_call.1
= control target key start
LH: loop header
LB: loop body
LE: loop exit
PB: predicated region body
PF: predicated region fallthrough
CT: control target
= control target key end

     0   :  { %s1575_s0 = inlined_call_operand.vmem [shape: bf16[32,128], index: 0, kind: input, shape index: {}]   ;;  %s1576_s1 = inlined_call_operand.vmem [shape: bf16[128,16], index: 1, kind: input, shape index: {}]   ;;  %s1577_s2 = inlined_call_operand.vmem [shape: f32[32,1], index: 2, kind: input, shape index: {}]   ;;  %s1578_s3 = inlined_call_operand.vmem [shape: f32[32,1], index: 3, kind: input, shape index: {}]   ;;  %s1579_s4 = inlined_call_operand.vmem [shape: bf16[2,32,4], index: 4, kind: input, shape index: {}]   ;;  %s1580_s5 = inlined_call_operand.vmem [shape: bf16[8,8], index: 5, kind: input, shape index: {}]   ;;  %s1581_s6 = inlined_call_operand.vmem [shape: bf16[4,8], index: 6, kind: input, shape index: {}]   ;;  %s1582_s7 = inlined_call_operand.vmem [shape: f32[1,8], index: 7, kind: input, shape index: {}]   ;;  %s1583_s8 = inlined_call_operand.vmem [shape: f32[1,8], index: 8, kind: input, shape index: {}]   ;;  %s1584_s9 = inlined_call_operand.vmem [shape: f32[1,8], index: 9, kind: input, shape index: {}]   ;;  %s1585_s10 = inlined_call_operand.vmem [shape: f32[2,32,8], index: 10, kind: output, shape index: {}]  }
   0x1   :  { %1586 = sst [smem:[#allocation5_spill]] %s1579_s4 }
   0x2   :  { %s1393_s13 = smov 0   ;;  %s1395_s14 = smov 0  }
   0x3   :  { %s1397_s15 = smov 0   ;;  %s1399_s16 = smov 0  }
   0x4   :  { %s1401_s17 = smov 0  }
   0x5 LB: > { %s32_s18 = sadd.s32 1, %s1328_s16  ;;  %s1125_s19 = sadd.s32 4294967295, %s1332_s17   ;;  %s1332_s17 = sphi %s1401_s17, %s20_s17   ;;  %s1328_s16 = sphi %s1399_s16, %s1592_s16   ;;  %s1324_s15 = sphi %s1397_s15, %s1591_s15   ;;  %s1320_s14 = sphi %s1395_s14, %s1590_s14   ;;  %s1316_s13 = sphi %s1393_s13, %s1589_s13  }
   0x6   : > { %p34_p0 = scmp.ge.s32.totalorder %s32_s18, 2  ;;  %p152_p1 = scmp.ne.s32.totalorder %s1320_s14, %s1316_s13 }
   0x7   : > { %p153_p2 = scmp.eq.s32.totalorder %s1332_s17, 0  ;;  %p287_p4 = scmp.eq.s32.totalorder %s1125_s19, 1 }
   0x8   : > { %s1594_s18 = smov (%p34_p0, %s32_s18), 0  ;;  %s145_s21 = sadd.s32 1, %s1320_s14 }
   0x9   : > { %p154_p3 = por %p153_p2, %p152_p1  ;;  %s142_s20 = ssub.s32 %s1328_s16, %s1594_s18 }
   0xa   : > { %p143_p5 = scmp.eq.s32.totalorder %s142_s20, 0  ;;  %p1428_p6 = por %p287_p4, %p152_p1 }
   0xb   : > { %p1129_p7 = scmp.ge.s32.totalorder %s1332_s17, 2 }
   0xc   : > { %s1433_s23 = scalar_select %p143_p5, %s1320_s14, %s145_s21  }
   0xd   : > { %333 = sbr.rel (%p1129_p7) target bundleno = 31 (0x1f), region = 40 }
  0x14   : > { %366 = sbr.rel (!%p154_p3) target bundleno = 31 (0x1f), region = 56  ;;  %s368_s24 = sand.u32 (%p154_p3), 1, %s1320_s14  }
  0x15   : > { %s1169_s25 = sshll.u32 (%p154_p3), %s1328_s16, 3  ;;  %s1130_s26 = sshll.u32 (%p154_p3), %s368_s24, 4 }
  0x16   : > { %s1588_s4 = sld [smem:[#allocation5_spill]] (%p154_p3)  ;;  %s370_s30 = scalar_lea.vmem (%p154_p3), [#allocation3], %s1130_s26 }
  0x1c   : > { %s373_s29 = scalar_lea.vmem %s1588_s4, %s1169_s25 }
  0x1d   : > { %v389_v0 = vld [vmem:[%s373_s29] sm:$0xff]   ;;  %v393_v1 = vld [vmem:[%s373_s29 + $0x10] sm:$0xff]  }
  0x1e   : > { %390 = vst [vmem:[%s370_s30] sm:$0xff] %v389_v0   ;;  %394 = vst [vmem:[%s370_s30 + $0x8] sm:$0xff] %v393_v1  }
  0x1f PF: > { %p1133_p8 = scmp.ge.s32.totalorder %s1332_s17, 1  ;;  %p426_p9 = scmp.lt.s32.totalorder %s1332_s17, 3 }
  0x21   : > { %p427_p10 = pnand %p1133_p8, %p426_p9 }
  0x22   : > { %v1283_v2 = vld [vmem:[%s1576_s1] sm:$0xff] (!%p427_p10)   ;;  %v1334_v3 = vmov (!%p427_p10), 0.0   ;;  %v1284_v4 = vld [vmem:[%s1576_s1 + $0x8] sm:$0xff] (!%p427_p10)   ;;  %vm1335_vm0 = vmmov (!%p427_p10), 0   ;;  %s1136_s21 = sshll.u32 (!%p427_p10), %s1324_s15, 1  ;;  %v1336_v5 = vmov (!%p427_p10), 0  }
  0x23   : > { %430 = sbr.rel (%p427_p10) target bundleno = 645 (0x285), region = 97  ;;  %1188 = vmatprep.subr.bf16.mxu0 (!%p427_p10), %v1334_v3  ;;  %1208 = vmatprep.subr.bf16.mxu1 (!%p427_p10), %v1334_v3  ;;  %p493_p11 = scmp.lt.s32.totalorder (!%p427_p10), %s1136_s21, 3  ;;  %v1285_v6 = vld [vmem:[%s1576_s1 + $0x10] sm:$0xff] (!%p427_p10)   ;;  %v1286_v7 = vld [vmem:[%s1576_s1 + $0x18] sm:$0xff] (!%p427_p10)   ;;  %vm526_vm1 = vcmask (!%p427_p10), 130048   ;;  %v1287_v10 = vld [vmem:[%s1576_s1 + $0x20] sm:$0xff] (!%p427_p10)  }
  0x24   : > { %1189 = vmatpush3.bf16.msra.mxu0 (!%p427_p10), %v1283_v2  ;;  %1204 = vmatprep.mubr.msk.bf16.mxu0 (!%p427_p10), %vm1335_vm0, %v1334_v3  ;;  %527 = vst.msk [vmem:[#allocation2] sm:$0xff] (!%p427_p10), %vm526_vm1, %v1334_v3  ;;  %528 = vst.msk [vmem:[#allocation2 + $0x8] sm:$0xff] (!%p427_p10), %vm526_vm1, %v1334_v3  ;;  %v1288_v12 = vld [vmem:[%s1576_s1 + $0x28] sm:$0xff] (!%p427_p10)   ;;  %v1289_v13 = vld [vmem:[%s1576_s1 + $0x30] sm:$0xff] (!%p427_p10)   ;;  %vm729_vm2 = vcmask (!%p427_p10), 1043456   ;;  %s433_s24 = sand.u32 (!%p427_p10), 1, %s1316_s13  }
  0x25   : > { %1190 = vmatprep.subr.bf16.mxu0 (!%p427_p10), %v1334_v3  ;;  %1210 = vmatprep.mubr.msk.bf16.mxu1 (!%p427_p10), %vm1335_vm0, %v1334_v3  ;;  %v1290_v14 = vld [vmem:[%s1576_s1 + $0x38] sm:$0xff] (!%p427_p10)   ;;  %v724_v16 = vld [vmem:[%s1580_s5] sm:$0xf] (!%p427_p10)  ;;  %vm786_vm5 = vcmask (!%p427_p10), 1041408   ;;  %vm725_vm6 = vcmask (!%p427_p10), 64512   ;;  %s1337_s28 = smov (!%p427_p10), 120  }
  0x26   : > { %1276 = vset.pattern.permute.xlu0 (!%p427_p10), %v1336_v5  ;;  %1277 = vset.pattern.permute.xlu1 (!%p427_p10), %v1336_v5  ;;  %v731_v17 = vsel (!%p427_p10), %vm729_vm2, %v724_v16, 0  ;;  %v776_v33 = vld [vmem:[%s1581_s6] sm:$0x3] (!%p427_p10)  ;;  %vm782_vm7 = vcmask (!%p427_p10), 31744  }
  0x27   : > { %1209 = vmatpush3.bf16.msra.mxu1 (!%p427_p10), %v731_v17  ;;  %v788_v37 = vsel (!%p427_p10), %vm786_vm5, %v776_v33, 0  ;;  %v840_v39 = vld [vmem:[%s1580_s5] sm:$0xf] (!%p427_p10) }
  0x28   : > { %1191 = vmatpush3.bf16.msra.mxu0 (!%p427_p10), %v1284_v4  ;;  %1214 = vmatprep.subr.bf16.mxu1 (!%p427_p10), %v1334_v3  ;;  %v848_v41 = vsel (!%p427_p10), %vm729_vm2, %v840_v39, 0  ;;  %v894_v42 = vld [vmem:[%s1581_s6] sm:$0x3] (!%p427_p10) }
  0x29   : > { %1192 = vmatprep.subr.bf16.mxu0 (!%p427_p10), %v1334_v3  ;;  %v904_v43 = vsel (!%p427_p10), %vm786_vm5, %v894_v42, 0  ;;  %v1151_v47 = vld [vmem:[%s1583_s8] ss:$0 sm:$0xff] (!%p427_p10) }
  0x2a   : > { %s1596_s21 = smov (!%p493_p11, %s1136_s21), 3  ;;  %v1152_v53 = vld [vmem:[%s1582_s7] ss:$0 sm:$0xff]  ;;  %s1170_s13 = sshll.u32 (%p1428_p6), %s1324_s15, 4 }
  0x2b   : > { %s1137_s26 = sshll.u32 %s1596_s21, 2  ;;  %s1139_s30 = sshll.u32 %s1596_s21, 3  ;;  %v529_v21 = vld [vmem:[#allocation2] sm:$0xff]  ;;  %v530_v23 = vld [vmem:[#allocation2 + $0x8] sm:$0xff] }
  0x2c   : > { %s499_s29 = scalar_lea.vmem %s1575_s0, %s1137_s26  ;;  %s511_s19 = scalar_lea.vmem %s1577_s2, %s1139_s30  ;;  %1193 = vmatpush3.bf16.msra.mxu0 %v1285_v6  ;;  %v1153_v55 = vld [vmem:[%s1584_s9] ss:$0 sm:$0xff] }
  0x2d   : > { %v652_v8 = vld [vmem:[%s511_s19] sm:$0xff]  ;;  %1194 = vmatprep.subr.bf16.mxu0 %v1334_v3  ;;  %v653_v9 = vld [vmem:[%s511_s19 + $0x8] sm:$0xff]  ;;  %s1478_s25 = scalar_lea.vmem %s1578_s3, %s1139_s30  ;;  %s961_s11 = scalar_lea.vmem (%p1428_p6), %s1585_s10, %s1170_s13 }
  0x2e   : > { %713 = vperm.xlu0 %1276, %v652_v8   ;;  %v660_v11 = vld [vmem:[%s1478_s25 + $0x8] sm:$0xff]  ;;  %v1291_v15 = vld [vmem:[%s499_s29] sm:$0xff]   ;;  %vm654_vm3 = vcmp.gt.f32.partialorder %v652_v8, 0.0  ;;  %vm655_vm4 = vcmp.gt.f32.partialorder %v653_v9, 0.0  ;;  %s1507_s29 = sshll.u32 %s433_s24, 4 }
  0x2f   : > { %v656_v18 = vsel %vm654_vm3, 1.0, %v1334_v3  ;;  %v657_v19 = vsel %vm655_vm4, 1.0, %v1334_v3  ;;  %s435_s4 = scalar_lea.vmem [#allocation3], %s1507_s29  ;;  %v659_v38 = vld [vmem:[%s1478_s25] sm:$0xff] }
  0x30   : > { %1195 = vmatpush3.bf16.msra.mxu0 %v1286_v7  ;;  %v1278_v20 = vpack.i.bf16 %v657_v19, %v656_v18  ;;  %v1292_v40 = vld [vmem:[%s435_s4] sm:$0xff]   ;;  %v1293_v45 = vld [vmem:[%s435_s4 + $0x8] sm:$0xff]   ;;  %s1135_s4 = sshll.u32 %s433_s24, 5 }
  0x31   : > { %1196 = vmatprep.subr.bf16.mxu0 %v1334_v3 }
  0x32   : > { %718 = vperm.xlu0 %1276, %v653_v9  }
  0x34   : > { %1197 = vmatpush3.bf16.msra.mxu0 %v1287_v10 }
  0x35   : > { %1198 = vmatprep.subr.bf16.mxu0 %v1334_v3 }
  0x36   : > { %669 = vperm.xlu0 %1276, %v660_v11  }
  0x38   : > { %1199 = vmatpush3.bf16.msra.mxu0 %v1288_v12 }
  0x39   : > { %1200 = vmatprep.subr.bf16.mxu0 %v1334_v3 }
  0x3c   : > { %1201 = vmatpush3.bf16.msra.mxu0 %v1289_v13 }
  0x3d   : > { %1202 = vmatprep.subr.bf16.mxu0 %v1334_v3 }
  0x40   : > { %1203 = vmatpush3.bf16.msra.mxu0 %v1290_v14 }
  0x43   : > { %1205 = vmatmul.mubr.bf16.vlgmr.msra.gmra.mrb[0].mxu0 %v1291_v15 }
  0xad   : > { %v714_v29 = vpop.permute.xlu0 %713 }
  0xb1   : > { %v719_v31 = vpop.permute.xlu0 %718 }
  0xb5   : > { %v670_v54 = vpop.permute.xlu0 %669 }
  0xb6   : > { %v679_v61 = vmul.f32 %v1151_v47, %v670_v54 }
  0xb8   : > { %v687_v1 = vadd.f32 %v1152_v53, %v679_v61 }
 0x116   : > { %v637_v22 = vpop.f32.mrb[0].mxu0 }
 0x117   : > { %v644_v24 = vadd.f32 %v637_v22, %v529_v21  ;;  %v1206_v25 = vpop.f32.mrb[1].mxu0 }
 0x118   : > { %v640_v26 = vpop.f32.mrb[2].mxu0 }
 0x119   : > { %647 = vst.msk [vmem:[#allocation2] sm:$0xff] %vm526_vm1, %v644_v24  ;;  %v645_v27 = vadd.f32 %v640_v26, %v530_v23  ;;  %v1207_v28 = vpop.f32.mrb[3].mxu0 }
 0x11b   : > { %648 = vst.msk [vmem:[#allocation2 + $0x8] sm:$0xff] %vm526_vm1, %v645_v27 }
 0x120   : > { %v709_v30 = vld [vmem:[#allocation2] sm:$0xff] }
 0x121   : > { %v721_v34 = vmul.f32 %v714_v29, %v709_v30 }
 0x122   : > { %v710_v32 = vld [vmem:[#allocation2 + $0x8] sm:$0xff] }
 0x123   : > { %v722_v35 = vmul.f32 %v719_v31, %v710_v32 }
 0x125   : > { %v723_v36 = vpack.c.bf16 %v722_v35, %v721_v34 }
 0x127   : > { %842 = vrot.lane.b32.xlu1 %v723_v36, %s1337_s28  ;;  %1211 = vmatmul.mubr.msk.bf16.vlgmr.msra.gmra.mrb[0].mxu1 %vm725_vm6, %v723_v36  ;;  %s491_s28 = scalar_lea.vmem [#allocation4], %s1135_s4 }
 0x128   : > { %1215 = vmatpush3.bf16.msra.mxu1 %v788_v37  ;;  %1216 = vmatprep.mubr.msk.bf16.mxu1 %vm1335_vm0, %v1334_v3 }
 0x129   : > { %1220 = vmatprep.subr.bf16.mxu1 %v1334_v3 }
 0x12b   : > { %664 = vperm.xlu1 %1277, %v659_v38  }
 0x12f   : > { %1279 = vperm.xlu1 %1277, %v1278_v20   ;;  %1217 = vmatmul.mubr.msk.bf16.vlgmr.msra.gmra.mrb[4].mxu1 %vm782_vm7, %v1292_v40 }
 0x130   : > { %1221 = vmatpush3.bf16.msra.mxu1 %v848_v41  ;;  %1222 = vmatprep.mubr.msk.bf16.mxu1 %vm1335_vm0, %v1334_v3 }
 0x131   : > { %1226 = vmatprep.subr.bf16.mxu1 %v1334_v3 }
 0x199   : > { %v843_v44 = vpop.permute.xlu1 %842 }
 0x19a   : > { %1223 = vmatmul.mubr.msk.bf16.vlgmr.msra.gmra.mrb[8].mxu1 %vm725_vm6, %v843_v44 }
 0x19b   : > { %1227 = vmatpush3.bf16.msra.mxu1 %v904_v43  ;;  %1228 = vmatprep.mubr.msk.bf16.mxu1 %vm1335_vm0, %v1334_v3 }
 0x1a2   : > { %1229 = vmatmul.mubr.msk.bf16.vlgmr.msra.gmra.mrb[12].mxu1 %vm782_vm7, %v1293_v45 }
 0x1aa   : > { %v665_v46 = vpop.permute.xlu1 %664 }
 0x1ab   : > { %v678_v49 = vmul.f32 %v1151_v47, %v665_v46 }
 0x1ad   : > { %v686_v57 = vadd.f32 %v1152_v53, %v678_v49 }
 0x1ae   : > { %v1280_v48 = vpop.permute.xlu1 %1279 }
 0x1af   : > { %v1281_v50 = vunpack.i.l.bf16 %v1280_v48  ;;  %v1282_v58 = vunpack.i.h.bf16 %v1280_v48 }
 0x1b1   : > { %v705_v59 = vmul.f32 %v1281_v50, %v1153_v55  ;;  %v706_v62 = vmul.f32 %v1282_v58, %v1153_v55 }
 0x1b3   : > { %v707_v63 = vadd.f32 %v705_v59, %v686_v57  ;;  %v708_v6 = vadd.f32 %v706_v62, %v687_v1 }
 0x1fa   : > { %v767_v51 = vpop.f32.mrb[0].mxu1 }
 0x1fb   : > { %v1212_v52 = vpop.f32.mrb[1].mxu1 }
 0x1fc   : > { %v770_v56 = vpop.f32.mrb[2].mxu1 }
 0x1fd   : > { %v1213_v60 = vpop.f32.mrb[3].mxu1 }
 0x202   : > { %v824_v0 = vpop.f32.mrb[4].mxu1 }
 0x203   : > { %v825_v2 = vadd.f32 %v824_v0, %v767_v51  ;;  %v1218_v3 = vpop.f32.mrb[5].mxu1 }
 0x204   : > { %v827_v4 = vpop.f32.mrb[6].mxu1 }
 0x205   : > { %v831_v5 = vadd.f32 %v825_v2, %v707_v63  ;;  %v828_v7 = vadd.f32 %v827_v4, %v770_v56  ;;  %v1219_v8 = vpop.f32.mrb[7].mxu1 }
 0x207   : > { %833 = vst.msk [vmem:[%s491_s28] sm:$0xff] %vm725_vm6, %v831_v5  ;;  %v832_v9 = vadd.f32 %v828_v7, %v708_v6 }
 0x209   : > { %834 = vst.msk [vmem:[%s491_s28 + $0x8] sm:$0xff] %vm725_vm6, %v832_v9 }
 0x20e   : > { %v995_v22 = vld [vmem:[%s491_s28] sm:$0xff] (%p1428_p6) }
 0x20f   : > { %996 = vst [vmem:[%s961_s11] sm:$0xff] (%p1428_p6), %v995_v22 }
 0x210   : > { %v997_v23 = vld [vmem:[%s491_s28 + $0x8] sm:$0xff] (%p1428_p6) }
 0x211   : > { %998 = vst [vmem:[%s961_s11 + $0x8] sm:$0xff] (%p1428_p6), %v997_v23 }
 0x26d   : > { %v884_v10 = vpop.f32.mrb[8].mxu1 }
 0x26e   : > { %v1224_v11 = vpop.f32.mrb[9].mxu1 }
 0x26f   : > { %v887_v12 = vpop.f32.mrb[10].mxu1 }
 0x270   : > { %v1225_v13 = vpop.f32.mrb[11].mxu1 }
 0x275   : > { %v940_v14 = vpop.f32.mrb[12].mxu1 }
 0x276   : > { %v941_v15 = vadd.f32 %v940_v14, %v884_v10  ;;  %v1230_v16 = vpop.f32.mrb[13].mxu1  ;;  %958 = sbr.rel (!%p1428_p6) target bundleno = 645 (0x285), region = 113 }
 0x277   : > { %v943_v17 = vpop.f32.mrb[14].mxu1 }
 0x278   : > { %v947_v18 = vadd.f32 %v941_v15, %v707_v63  ;;  %v944_v19 = vadd.f32 %v943_v17, %v887_v12  ;;  %v1231_v20 = vpop.f32.mrb[15].mxu1 }
 0x27a   : > { %1162 = vst.msk [vmem:[%s491_s28 + $0x10] sm:$0xff] %vm725_vm6, %v947_v18  ;;  %v948_v21 = vadd.f32 %v944_v19, %v708_v6 }
 0x27c   : > { %1163 = vst.msk [vmem:[%s491_s28 + $0x18] sm:$0xff] %vm725_vm6, %v948_v21 }
 0x281   : > { %v999_v24 = vld [vmem:[%s491_s28 + $0x10] sm:$0xff] }
 0x282   : > { %1000 = vst [vmem:[%s961_s11 + $0x20] sm:$0xff] %v999_v24 }
 0x283   : > { %v1001_v25 = vld [vmem:[%s491_s28 + $0x18] sm:$0xff] }
 0x284   : > { %1002 = vst [vmem:[%s961_s11 + $0x28] sm:$0xff] %v1001_v25 }
 0x285 PF: > { %s20_s17 = sadd.s32 1, %s1332_s17   ;;  %s1589_s13 = smov %s1320_s14 }
 0x286   : > { %p17_p12 = scmp.ge.s32.totalorder %s20_s17, 4   ;;  %s1590_s14 = smov %s1433_s23 }
 0x287   : > { %s1591_s15 = smov %s1328_s16  ;;  %s1592_s16 = smov %s1594_s18 }
 0x288   :  { %19 = sbr.rel (!%p17_p12) target bundleno = 5 (0x5), region = 196 }

</bundles_post_ra>
